<compile_context>
chip_gen: v5e
topology: v5e:2x2
jax: 0.10.0
libtpu: 0.0.40
codegen_flags: <defaults>
</compile_context>

<pallas_src>
import math

import jax
import jax.numpy as jnp
from jax.experimental import pallas as pl
from jax.experimental.pallas import tpu as pltpu

EPS = 1e-6
_VMEM_LIMIT = 48 * 1024 * 1024


def round_to_multiple_of_64(x):
    # NOTE: matches the PyTorch source exactly (its quirky "+31" rounding).
    return (int(x) + 31) // 64 * 64


# ----------------------------- tiling helpers -----------------------------

def _pick_row_tile(m):
    if m >= 1024:
        return 512
    if m >= 512:
        return 256
    if m >= 256:
        return 128                      # keep >= 2 row tiles for v7x's 2 TensorCores
    return ((m + 7) // 8) * 8           # whole (padded) M as a single row tile


def _pick_k_tile(inner, d):
    # Single k tile keeps all three bf16 weight slabs resident in VMEM across row tiles
    # (constant index_map => DMA issued once).  Otherwise tile the reduction axis.
    if 3 * d * inner * 2 * 2 <= 24 * 1024 * 1024:   # 3 weights, bf16, double-buffered
        return inner
    for t in (1024, 512, 256, 128):
        if inner % t == 0:
            return t
    return inner                        # lane-dense fallback (relies on vmem_limit_bytes)


# ----------------------------- Pallas kernels -----------------------------

def _rmsnorm_kernel(x_ref, g_ref, o_ref):
    # Only used for the degenerate n_layers == 0 path.
    x = x_ref[...].astype(jnp.float32)
    ms = jnp.mean(x * x, axis=-1, keepdims=True)
    o_ref[...] = (x * (g_ref[...].astype(jnp.float32) * jax.lax.rsqrt(ms + EPS))
                  ).astype(o_ref.dtype)


def _make_block_kernel(apply_in_norm, apply_out_norm):
    """Fully fused MappingFeedForwardBlock kernel (grid = (row tiles, inner k-tiles))."""

    def kernel(x_ref, in_g_ref, blk_g_ref, out_g_ref, wh_ref, wg_ref, wd_ref,
               o_ref, xn_ref, acc_ref):
        k = pl.program_id(1)

        @pl.when(k == 0)
        def _prologue():
            x = x_ref[...].astype(jnp.float32)
            if apply_in_norm:                      # fused in_norm (first block only)
                ms0 = jnp.mean(x * x, axis=-1, keepdims=True)
                x = x * (in_g_ref[...].astype(jnp.float32) * jax.lax.rsqrt(ms0 + EPS))
            acc_ref[...] = x                       # residual skip seeds the accumulator
            ms = jnp.mean(x * x, axis=-1, keepdims=True)
            xn = x * (blk_g_ref[...].astype(jnp.float32) * jax.lax.rsqrt(ms + EPS))
            xn_ref[...] = xn.astype(xn_ref.dtype)  # bf16 MXU operand, computed once per row tile

        xn = xn_ref[...]
        h = jnp.dot(xn, wh_ref[...], preferred_element_type=jnp.float32)
        gate = jnp.dot(xn, wg_ref[...], preferred_element_type=jnp.float32)
        # Exact-erf GELU to match PyTorch F.gelu default numerics.
        gelu = 0.5 * gate * (1.0 + jax.lax.erf(gate * (1.0 / math.sqrt(2.0))))
        hk = (h * gelu).astype(wd_ref.dtype)       # bf16 operand for the down_proj MXU pass
        acc_ref[...] += jnp.dot(hk, wd_ref[...], preferred_element_type=jnp.float32)

        @pl.when(k == pl.num_programs(1) - 1)
        def _finalize():
            y = acc_ref[...]
            if apply_out_norm:                     # fused out_norm (last block only)
                ms = jnp.mean(y * y, axis=-1, keepdims=True)
                y = y * (out_g_ref[...].astype(jnp.float32) * jax.lax.rsqrt(ms + EPS))
            o_ref[...] = y.astype(o_ref.dtype)

    return kernel


# ----------------------------- Pallas wrappers -----------------------------

def rms_norm(xp, scale, tm):
    """Row-tiled RMSNorm (pre-padded rows). Used only when there are no blocks."""
    mp, d = xp.shape
    return pl.pallas_call(
        _rmsnorm_kernel,
        out_shape=jax.ShapeDtypeStruct((mp, d), xp.dtype),
        grid_spec=pltpu.PrefetchScalarGridSpec(
            num_scalar_prefetch=0, grid=(mp // tm,),
            in_specs=[pl.BlockSpec((tm, d), lambda i: (i, 0)),
                      pl.BlockSpec((1, d), lambda i: (0, 0))],
            out_specs=pl.BlockSpec((tm, d), lambda i: (i, 0))),
        compiler_params=pltpu.CompilerParams(
            dimension_semantics=("parallel",),
            vmem_limit_bytes=_VMEM_LIMIT),
    )(xp, scale.reshape(1, d))


def mapping_ff_block(xp, bp, in_g, out_g, *, apply_in_norm, apply_out_norm, tm):
    """One fully fused MappingFeedForwardBlock on pre-padded rows xp: (Mp, D)."""
    mp, d = xp.shape
    inner = bp['wh'].shape[1]
    tk = _pick_k_tile(inner, d)

    kernel = _make_block_kernel(apply_in_norm, apply_out_norm)
    return pl.pallas_call(
        kernel,
        out_shape=jax.ShapeDtypeStruct((mp, d), xp.dtype),
        grid_spec=pltpu.PrefetchScalarGridSpec(
            num_scalar_prefetch=0,
            grid=(mp // tm, inner // tk),
            in_specs=[
                pl.BlockSpec((tm, d), lambda i, k: (i, 0)),     # x
                pl.BlockSpec((1, d), lambda i, k: (0, 0)),      # in_norm gamma
                pl.BlockSpec((1, d), lambda i, k: (0, 0)),      # block norm gamma
                pl.BlockSpec((1, d), lambda i, k: (0, 0)),      # out_norm gamma
                pl.BlockSpec((d, tk), lambda i, k: (0, k)),     # wh (value half)
                pl.BlockSpec((d, tk), lambda i, k: (0, k)),     # wg (gate half)
                pl.BlockSpec((tk, d), lambda i, k: (k, 0)),     # wd (down proj)
            ],
            out_specs=pl.BlockSpec((tm, d), lambda i, k: (i, 0)),
            scratch_shapes=[pltpu.VMEM((tm, d), jnp.bfloat16),   # xn (RMSNorm'd rows)
                            pltpu.VMEM((tm, d), jnp.float32)]),  # f32 accumulator (+skip)
        compiler_params=pltpu.CompilerParams(
            dimension_semantics=("parallel", "arbitrary"),
            vmem_limit_bytes=_VMEM_LIMIT),
    )(xp, in_g.reshape(1, d), bp['norm_g'].reshape(1, d), out_g.reshape(1, d),
      bp['wh'], bp['wg'], bp['wd'])


def mapping_network(x, params):
    """MappingNetwork forward. x: (..., dim)."""
    shape = x.shape
    d = shape[-1]
    x2 = x.reshape(-1, d)
    m = x2.shape[0]

    # Pad rows once; zero rows are benign through RMSNorm / matmuls / residual.
    tm = _pick_row_tile(m)
    mp = -(-m // tm) * tm
    if mp != m:
        x2 = jnp.pad(x2, ((0, mp - m), (0, 0)))

    blocks = params['blocks']
    if len(blocks) == 0:
        x2 = rms_norm(x2, params['in_norm_g'], tm)
        x2 = rms_norm(x2, params['out_norm_g'], tm)
    else:
        last = len(blocks) - 1
        for idx, bp in enumerate(blocks):
            # TODO(synk): nn.Dropout is the inference/identity path (no RNG mask kernel).
            x2 = mapping_ff_block(
                x2, bp, params['in_norm_g'], params['out_norm_g'],
                apply_in_norm=(idx == 0), apply_out_norm=(idx == last), tm=tm)

    return x2[:m].reshape(shape)


# ----------------------------- parameters -----------------------------

def init_params(key, n_layers, dim, mult):
    inner = round_to_multiple_of_64(dim * mult)
    keys = jax.random.split(key, max(n_layers, 1))
    blocks = []
    for k in keys[:n_layers]:
        k1, k2, k3 = jax.random.split(k, 3)
        blocks.append({
            'norm_g': jnp.ones((dim,), jnp.float32),
            # LinearGEGLU weight (2*inner, dim) stored transposed, split into value/gate
            # halves, and kept in bf16 (MXU-native) — accumulation stays in f32.
            'wh': (jax.random.normal(k1, (dim, inner), jnp.float32) * 0.02).astype(jnp.bfloat16),
            'wg': (jax.random.normal(k2, (dim, inner), jnp.float32) * 0.02).astype(jnp.bfloat16),
            # down_proj is zero-initialized in PyTorch; random here so the kernel path is
            # actually exercised (init values do not change forward semantics).
            'wd': (jax.random.normal(k3, (inner, dim), jnp.float32) * 0.02).astype(jnp.bfloat16),
        })
    params = {
        'in_norm_g': jnp.ones((dim,), jnp.float32),
        'out_norm_g': jnp.ones((dim,), jnp.float32),
        'blocks': blocks,
    }
    return params, inner


# ----------------------------- pure-JAX reference -----------------------------

def _ref_rms(x, g):
    x32 = x.astype(jnp.float32)
    ms = jnp.mean(x32 * x32, axis=-1, keepdims=True)
    return (x32 * (g.astype(jnp.float32) * jax.lax.rsqrt(ms + EPS))).astype(x.dtype)


def _ref_forward(x2, params):
    x2 = _ref_rms(x2, params['in_norm_g'])
    for bp in params['blocks']:
        skip = x2
        xn = _ref_rms(x2, bp['norm_g'])
        h = xn @ bp['wh'].astype(jnp.float32)
        gate = xn @ bp['wg'].astype(jnp.float32)
        gelu = 0.5 * gate * (1.0 + jax.lax.erf(gate / math.sqrt(2.0)))
        x2 = (h * gelu) @ bp['wd'].astype(jnp.float32) + skip
    return _ref_rms(x2, params['out_norm_g'])


if __name__ == "__main__":
    n_layers, dim, mult = 2, 32, 3          # inner_dim = round_to_multiple_of_64(96) = 64
    B, S = 2, 8

    key = jax.random.PRNGKey(0)
    kp, kx = jax.random.split(key)
    params, inner_dim = init_params(kp, n_layers, dim, mult)
    x = jax.random.normal(kx, (B, S, dim), jnp.float32)

    fwd = jax.jit(lambda xx: mapping_network(xx, params))
    out = jax.block_until_ready(fwd(x))
    assert out.shape == x.shape and out.dtype == x.dtype

    ref = _ref_forward(x.reshape(-1, dim), params).reshape(x.shape)
    max_err = float(jnp.max(jnp.abs(out - ref)))
    assert max_err < 1e-2, f"max abs err {max_err}"

    print("KERNEL_OK")
</pallas_src>

<mosaic_0001>
module attributes {stable_mosaic.version = 11 : i64} {
  func.func @kernel(%arg0: i32, %arg1: i32, %arg2: memref<16x32xf32, #tpu.memory_space<vmem>>, %arg3: memref<1x32xf32, #tpu.memory_space<vmem>>, %arg4: memref<1x32xf32, #tpu.memory_space<vmem>>, %arg5: memref<1x32xf32, #tpu.memory_space<vmem>>, %arg6: memref<32x64xbf16, #tpu.memory_space<vmem>>, %arg7: memref<32x64xbf16, #tpu.memory_space<vmem>>, %arg8: memref<64x32xbf16, #tpu.memory_space<vmem>>, %arg9: memref<16x32xf32, #tpu.memory_space<vmem>>, %arg10: memref<16x32xbf16, #tpu.memory_space<vmem>>, %arg11: memref<16x32xf32, #tpu.memory_space<vmem>>) attributes {dimension_semantics = [#tpu.dimension_semantics<parallel>, #tpu.dimension_semantics<arbitrary>], iteration_bounds = array<i64: 1, 1>, scalar_prefetch = 0 : i64, scratch_operands = 2 : i64, tpu.core_type = #tpu.core_type<tc>, window_params = [{transform_indices = @transform_0, window_bounds = array<i64: 16, 32>}, {pipeline_mode = #tpu.pipeline_mode<synchronous>, transform_indices = @transform_1, window_bounds = array<i64: 1, 32>}, {pipeline_mode = #tpu.pipeline_mode<synchronous>, transform_indices = @transform_2, window_bounds = array<i64: 1, 32>}, {pipeline_mode = #tpu.pipeline_mode<synchronous>, transform_indices = @transform_3, window_bounds = array<i64: 1, 32>}, {transform_indices = @transform_4, window_bounds = array<i64: 32, 64>}, {transform_indices = @transform_5, window_bounds = array<i64: 32, 64>}, {transform_indices = @transform_6, window_bounds = array<i64: 64, 32>}, {transform_indices = @transform_7, window_bounds = array<i64: 16, 32>}]} {
    %c0_i32 = arith.constant 0 : i32
    %0 = arith.cmpi eq, %arg1, %c0_i32 : i32
    %1 = arith.extui %0 : i1 to i32
    %c0_i32_0 = arith.constant 0 : i32
    %2 = arith.cmpi ne, %1, %c0_i32_0 : i32
    scf.if %2 {
      %c0_19 = arith.constant 0 : index
      %c0_20 = arith.constant 0 : index
      %26 = vector.load %arg2[%c0_19, %c0_20] : memref<16x32xf32, #tpu.memory_space<vmem>>, vector<16x32xf32>
      %27 = arith.mulf %26, %26 : vector<16x32xf32>
      %cst_21 = arith.constant dense<0.000000e+00> : vector<16xf32>
      %28 = vector.multi_reduction <add>, %27, %cst_21 [1] : vector<16x32xf32> to vector<16xf32>
      %29 = vector.shape_cast %28 : vector<16xf32> to vector<16x1xf32>
      %cst_22 = arith.constant 3.200000e+01 : f32
      %30 = vector.broadcast %cst_22 : f32 to vector<16x1xf32>
      %31 = arith.divf %29, %30 : vector<16x1xf32>
      %c0_23 = arith.constant 0 : index
      %c0_24 = arith.constant 0 : index
      %32 = vector.load %arg3[%c0_23, %c0_24] : memref<1x32xf32, #tpu.memory_space<vmem>>, vector<1x32xf32>
      %cst_25 = arith.constant 9.99999997E-7 : f32
      %33 = vector.broadcast %cst_25 : f32 to vector<16x1xf32>
      %34 = arith.addf %31, %33 : vector<16x1xf32>
      %35 = math.rsqrt %34 : vector<16x1xf32>
      %36 = vector.broadcast %32 : vector<1x32xf32> to vector<16x32xf32>
      %37 = vector.broadcast %35 : vector<16x1xf32> to vector<16x32xf32>
      %38 = arith.mulf %36, %37 : vector<16x32xf32>
      %39 = arith.mulf %26, %38 : vector<16x32xf32>
      %c0_26 = arith.constant 0 : index
      %c0_27 = arith.constant 0 : index
      %40 = vector.load %arg11[%c0_26, %c0_27] : memref<16x32xf32, #tpu.memory_space<vmem>>, vector<16x32xf32>
      tpu.vector_store %arg11[%c0_26, %c0_27], %39 {strides = array<i32>} : memref<16x32xf32, #tpu.memory_space<vmem>>, vector<16x32xf32>,
      %41 = arith.mulf %39, %39 : vector<16x32xf32>
      %cst_28 = arith.constant dense<0.000000e+00> : vector<16xf32>
      %42 = vector.multi_reduction <add>, %41, %cst_28 [1] : vector<16x32xf32> to vector<16xf32>
      %43 = vector.shape_cast %42 : vector<16xf32> to vector<16x1xf32>
      %cst_29 = arith.constant 3.200000e+01 : f32
      %44 = vector.broadcast %cst_29 : f32 to vector<16x1xf32>
      %45 = arith.divf %43, %44 : vector<16x1xf32>
      %c0_30 = arith.constant 0 : index
      %c0_31 = arith.constant 0 : index
      %46 = vector.load %arg4[%c0_30, %c0_31] : memref<1x32xf32, #tpu.memory_space<vmem>>, vector<1x32xf32>
      %cst_32 = arith.constant 9.99999997E-7 : f32
      %47 = vector.broadcast %cst_32 : f32 to vector<16x1xf32>
      %48 = arith.addf %45, %47 : vector<16x1xf32>
      %49 = math.rsqrt %48 : vector<16x1xf32>
      %50 = vector.broadcast %46 : vector<1x32xf32> to vector<16x32xf32>
      %51 = vector.broadcast %49 : vector<16x1xf32> to vector<16x32xf32>
      %52 = arith.mulf %50, %51 : vector<16x32xf32>
      %53 = arith.mulf %39, %52 : vector<16x32xf32>
      %54 = arith.truncf %53 : vector<16x32xf32> to vector<16x32xbf16>
      %c0_33 = arith.constant 0 : index
      %c0_34 = arith.constant 0 : index
      %55 = vector.load %arg10[%c0_33, %c0_34] : memref<16x32xbf16, #tpu.memory_space<vmem>>, vector<16x32xbf16>
      tpu.vector_store %arg10[%c0_33, %c0_34], %54 {strides = array<i32>} : memref<16x32xbf16, #tpu.memory_space<vmem>>, vector<16x32xbf16>,
    } else {
    }
    %c0 = arith.constant 0 : index
    %c0_1 = arith.constant 0 : index
    %3 = vector.load %arg10[%c0, %c0_1] : memref<16x32xbf16, #tpu.memory_space<vmem>>, vector<16x32xbf16>
    %c0_2 = arith.constant 0 : index
    %c0_3 = arith.constant 0 : index
    %4 = vector.load %arg6[%c0_2, %c0_3] : memref<32x64xbf16, #tpu.memory_space<vmem>>, vector<32x64xbf16>
    %cst = arith.constant dense<0.000000e+00> : vector<16x64xf32>
    %5 = tpu.matmul %3, %4, %cst {dimension_numbers = #tpu.dot_dimension_numbers<[1], [0], [0], [1], [0, 0, 1, 1], [], []>} : vector<16x32xbf16>, vector<32x64xbf16>, vector<16x64xf32> -> vector<16x64xf32>
    %c0_4 = arith.constant 0 : index
    %c0_5 = arith.constant 0 : index
    %6 = vector.load %arg7[%c0_4, %c0_5] : memref<32x64xbf16, #tpu.memory_space<vmem>>, vector<32x64xbf16>
    %cst_6 = arith.constant dense<0.000000e+00> : vector<16x64xf32>
    %7 = tpu.matmul %3, %6, %cst_6 {dimension_numbers = #tpu.dot_dimension_numbers<[1], [0], [0], [1], [0, 0, 1, 1], [], []>} : vector<16x32xbf16>, vector<32x64xbf16>, vector<16x64xf32> -> vector<16x64xf32>
    %cst_7 = arith.constant 5.000000e-01 : f32
    %8 = vector.broadcast %cst_7 : f32 to vector<16x64xf32>
    %9 = arith.mulf %8, %7 : vector<16x64xf32>
    %cst_8 = arith.constant 0.707106769 : f32
    %10 = vector.broadcast %cst_8 : f32 to vector<16x64xf32>
    %11 = arith.mulf %7, %10 : vector<16x64xf32>
    %12 = math.erf %11 : vector<16x64xf32>
    %cst_9 = arith.constant 1.000000e+00 : f32
    %13 = vector.broadcast %cst_9 : f32 to vector<16x64xf32>
    %14 = arith.addf %13, %12 : vector<16x64xf32>
    %15 = arith.mulf %9, %14 : vector<16x64xf32>
    %16 = arith.mulf %5, %15 : vector<16x64xf32>
    %17 = arith.truncf %16 : vector<16x64xf32> to vector<16x64xbf16>
    %c0_10 = arith.constant 0 : index
    %c0_11 = arith.constant 0 : index
    %18 = vector.load %arg11[%c0_10, %c0_11] : memref<16x32xf32, #tpu.memory_space<vmem>>, vector<16x32xf32>
    %c0_12 = arith.constant 0 : index
    %c0_13 = arith.constant 0 : index
    %19 = vector.load %arg8[%c0_12, %c0_13] : memref<64x32xbf16, #tpu.memory_space<vmem>>, vector<64x32xbf16>
    %cst_14 = arith.constant dense<0.000000e+00> : vector<16x32xf32>
    %20 = tpu.matmul %17, %19, %cst_14 {dimension_numbers = #tpu.dot_dimension_numbers<[1], [0], [0], [1], [0, 0, 1, 1], [], []>} : vector<16x64xbf16>, vector<64x32xbf16>, vector<16x32xf32> -> vector<16x32xf32>
    %21 = arith.addf %18, %20 : vector<16x32xf32>
    %c0_15 = arith.constant 0 : index
    %c0_16 = arith.constant 0 : index
    %22 = vector.load %arg11[%c0_15, %c0_16] : memref<16x32xf32, #tpu.memory_space<vmem>>, vector<16x32xf32>
    tpu.vector_store %arg11[%c0_15, %c0_16], %21 {strides = array<i32>} : memref<16x32xf32, #tpu.memory_space<vmem>>, vector<16x32xf32>,
    %c0_i32_17 = arith.constant 0 : i32
    %23 = arith.cmpi eq, %arg1, %c0_i32_17 : i32
    %24 = arith.extui %23 : i1 to i32
    %c0_i32_18 = arith.constant 0 : i32
    %25 = arith.cmpi ne, %24, %c0_i32_18 : i32
    scf.if %25 {
      %c0_19 = arith.constant 0 : index
      %c0_20 = arith.constant 0 : index
      %26 = vector.load %arg11[%c0_19, %c0_20] : memref<16x32xf32, #tpu.memory_space<vmem>>, vector<16x32xf32>
      %c0_21 = arith.constant 0 : index
      %c0_22 = arith.constant 0 : index
      %27 = vector.load %arg9[%c0_21, %c0_22] : memref<16x32xf32, #tpu.memory_space<vmem>>, vector<16x32xf32>
      tpu.vector_store %arg9[%c0_21, %c0_22], %26 {strides = array<i32>} : memref<16x32xf32, #tpu.memory_space<vmem>>, vector<16x32xf32>,
    } else {
    }
    return
  }
  func.func @transform_0(%arg0: i32, %arg1: i32) -> (i32, i32) {
    %c0_i32 = arith.constant 0 : i32
    %c0_i32_0 = arith.constant 0 : i32
    return %arg0, %c0_i32 : i32, i32
  }
  func.func @transform_1(%arg0: i32, %arg1: i32) -> (i32, i32) {
    %c0_i32 = arith.constant 0 : i32
    %c0_i32_0 = arith.constant 0 : i32
    %c0_i32_1 = arith.constant 0 : i32
    return %c0_i32, %c0_i32_0 : i32, i32
  }
  func.func @transform_2(%arg0: i32, %arg1: i32) -> (i32, i32) {
    %c0_i32 = arith.constant 0 : i32
    %c0_i32_0 = arith.constant 0 : i32
    %c0_i32_1 = arith.constant 0 : i32
    return %c0_i32, %c0_i32_0 : i32, i32
  }
  func.func @transform_3(%arg0: i32, %arg1: i32) -> (i32, i32) {
    %c0_i32 = arith.constant 0 : i32
    %c0_i32_0 = arith.constant 0 : i32
    %c0_i32_1 = arith.constant 0 : i32
    return %c0_i32, %c0_i32_0 : i32, i32
  }
  func.func @transform_4(%arg0: i32, %arg1: i32) -> (i32, i32) {
    %c0_i32 = arith.constant 0 : i32
    %c0_i32_0 = arith.constant 0 : i32
    return %c0_i32, %arg1 : i32, i32
  }
  func.func @transform_5(%arg0: i32, %arg1: i32) -> (i32, i32) {
    %c0_i32 = arith.constant 0 : i32
    %c0_i32_0 = arith.constant 0 : i32
    return %c0_i32, %arg1 : i32, i32
  }
  func.func @transform_6(%arg0: i32, %arg1: i32) -> (i32, i32) {
    %c0_i32 = arith.constant 0 : i32
    %c0_i32_0 = arith.constant 0 : i32
    return %arg1, %c0_i32 : i32, i32
  }
  func.func @transform_7(%arg0: i32, %arg1: i32) -> (i32, i32) {
    %c0_i32 = arith.constant 0 : i32
    %c0_i32_0 = arith.constant 0 : i32
    return %arg0, %c0_i32 : i32, i32
  }
}

module attributes {stable_mosaic.version = 11 : i64} {
  func.func @kernel(%arg0: i32, %arg1: i32, %arg2: memref<16x32xf32, #tpu.memory_space<vmem>>, %arg3: memref<1x32xf32, #tpu.memory_space<vmem>>, %arg4: memref<1x32xf32, #tpu.memory_space<vmem>>, %arg5: memref<1x32xf32, #tpu.memory_space<vmem>>, %arg6: memref<32x64xbf16, #tpu.memory_space<vmem>>, %arg7: memref<32x64xbf16, #tpu.memory_space<vmem>>, %arg8: memref<64x32xbf16, #tpu.memory_space<vmem>>, %arg9: memref<16x32xf32, #tpu.memory_space<vmem>>, %arg10: memref<16x32xbf16, #tpu.memory_space<vmem>>, %arg11: memref<16x32xf32, #tpu.memory_space<vmem>>) attributes {dimension_semantics = [#tpu.dimension_semantics<parallel>, #tpu.dimension_semantics<arbitrary>], iteration_bounds = array<i64: 1, 1>, scalar_prefetch = 0 : i64, scratch_operands = 2 : i64, tpu.core_type = #tpu.core_type<tc>, window_params = [{transform_indices = @transform_0, window_bounds = array<i64: 16, 32>}, {pipeline_mode = #tpu.pipeline_mode<synchronous>, transform_indices = @transform_1, window_bounds = array<i64: 1, 32>}, {pipeline_mode = #tpu.pipeline_mode<synchronous>, transform_indices = @transform_2, window_bounds = array<i64: 1, 32>}, {pipeline_mode = #tpu.pipeline_mode<synchronous>, transform_indices = @transform_3, window_bounds = array<i64: 1, 32>}, {transform_indices = @transform_4, window_bounds = array<i64: 32, 64>}, {transform_indices = @transform_5, window_bounds = array<i64: 32, 64>}, {transform_indices = @transform_6, window_bounds = array<i64: 64, 32>}, {transform_indices = @transform_7, window_bounds = array<i64: 16, 32>}]} {
    %c0_i32 = arith.constant 0 : i32
    %0 = arith.cmpi eq, %arg1, %c0_i32 : i32
    %1 = arith.extui %0 : i1 to i32
    %c0_i32_0 = arith.constant 0 : i32
    %2 = arith.cmpi ne, %1, %c0_i32_0 : i32
    scf.if %2 {
      %c0_19 = arith.constant 0 : index
      %c0_20 = arith.constant 0 : index
      %26 = vector.load %arg2[%c0_19, %c0_20] : memref<16x32xf32, #tpu.memory_space<vmem>>, vector<16x32xf32>
      %c0_21 = arith.constant 0 : index
      %c0_22 = arith.constant 0 : index
      %27 = vector.load %arg11[%c0_21, %c0_22] : memref<16x32xf32, #tpu.memory_space<vmem>>, vector<16x32xf32>
      tpu.vector_store %arg11[%c0_21, %c0_22], %26 {strides = array<i32>} : memref<16x32xf32, #tpu.memory_space<vmem>>, vector<16x32xf32>,
      %28 = arith.mulf %26, %26 : vector<16x32xf32>
      %cst_23 = arith.constant dense<0.000000e+00> : vector<16xf32>
      %29 = vector.multi_reduction <add>, %28, %cst_23 [1] : vector<16x32xf32> to vector<16xf32>
      %30 = vector.shape_cast %29 : vector<16xf32> to vector<16x1xf32>
      %cst_24 = arith.constant 3.200000e+01 : f32
      %31 = vector.broadcast %cst_24 : f32 to vector<16x1xf32>
      %32 = arith.divf %30, %31 : vector<16x1xf32>
      %c0_25 = arith.constant 0 : index
      %c0_26 = arith.constant 0 : index
      %33 = vector.load %arg4[%c0_25, %c0_26] : memref<1x32xf32, #tpu.memory_space<vmem>>, vector<1x32xf32>
      %cst_27 = arith.constant 9.99999997E-7 : f32
      %34 = vector.broadcast %cst_27 : f32 to vector<16x1xf32>
      %35 = arith.addf %32, %34 : vector<16x1xf32>
      %36 = math.rsqrt %35 : vector<16x1xf32>
      %37 = vector.broadcast %33 : vector<1x32xf32> to vector<16x32xf32>
      %38 = vector.broadcast %36 : vector<16x1xf32> to vector<16x32xf32>
      %39 = arith.mulf %37, %38 : vector<16x32xf32>
      %40 = arith.mulf %26, %39 : vector<16x32xf32>
      %41 = arith.truncf %40 : vector<16x32xf32> to vector<16x32xbf16>
      %c0_28 = arith.constant 0 : index
      %c0_29 = arith.constant 0 : index
      %42 = vector.load %arg10[%c0_28, %c0_29] : memref<16x32xbf16, #tpu.memory_space<vmem>>, vector<16x32xbf16>
      tpu.vector_store %arg10[%c0_28, %c0_29], %41 {strides = array<i32>} : memref<16x32xbf16, #tpu.memory_space<vmem>>, vector<16x32xbf16>,
    } else {
    }
    %c0 = arith.constant 0 : index
    %c0_1 = arith.constant 0 : index
    %3 = vector.load %arg10[%c0, %c0_1] : memref<16x32xbf16, #tpu.memory_space<vmem>>, vector<16x32xbf16>
    %c0_2 = arith.constant 0 : index
    %c0_3 = arith.constant 0 : index
    %4 = vector.load %arg6[%c0_2, %c0_3] : memref<32x64xbf16, #tpu.memory_space<vmem>>, vector<32x64xbf16>
    %cst = arith.constant dense<0.000000e+00> : vector<16x64xf32>
    %5 = tpu.matmul %3, %4, %cst {dimension_numbers = #tpu.dot_dimension_numbers<[1], [0], [0], [1], [0, 0, 1, 1], [], []>} : vector<16x32xbf16>, vector<32x64xbf16>, vector<16x64xf32> -> vector<16x64xf32>
    %c0_4 = arith.constant 0 : index
    %c0_5 = arith.constant 0 : index
    %6 = vector.load %arg7[%c0_4, %c0_5] : memref<32x64xbf16, #tpu.memory_space<vmem>>, vector<32x64xbf16>
    %cst_6 = arith.constant dense<0.000000e+00> : vector<16x64xf32>
    %7 = tpu.matmul %3, %6, %cst_6 {dimension_numbers = #tpu.dot_dimension_numbers<[1], [0], [0], [1], [0, 0, 1, 1], [], []>} : vector<16x32xbf16>, vector<32x64xbf16>, vector<16x64xf32> -> vector<16x64xf32>
    %cst_7 = arith.constant 5.000000e-01 : f32
    %8 = vector.broadcast %cst_7 : f32 to vector<16x64xf32>
    %9 = arith.mulf %8, %7 : vector<16x64xf32>
    %cst_8 = arith.constant 0.707106769 : f32
    %10 = vector.broadcast %cst_8 : f32 to vector<16x64xf32>
    %11 = arith.mulf %7, %10 : vector<16x64xf32>
    %12 = math.erf %11 : vector<16x64xf32>
    %cst_9 = arith.constant 1.000000e+00 : f32
    %13 = vector.broadcast %cst_9 : f32 to vector<16x64xf32>
    %14 = arith.addf %13, %12 : vector<16x64xf32>
    %15 = arith.mulf %9, %14 : vector<16x64xf32>
    %16 = arith.mulf %5, %15 : vector<16x64xf32>
    %17 = arith.truncf %16 : vector<16x64xf32> to vector<16x64xbf16>
    %c0_10 = arith.constant 0 : index
    %c0_11 = arith.constant 0 : index
    %18 = vector.load %arg11[%c0_10, %c0_11] : memref<16x32xf32, #tpu.memory_space<vmem>>, vector<16x32xf32>
    %c0_12 = arith.constant 0 : index
    %c0_13 = arith.constant 0 : index
    %19 = vector.load %arg8[%c0_12, %c0_13] : memref<64x32xbf16, #tpu.memory_space<vmem>>, vector<64x32xbf16>
    %cst_14 = arith.constant dense<0.000000e+00> : vector<16x32xf32>
    %20 = tpu.matmul %17, %19, %cst_14 {dimension_numbers = #tpu.dot_dimension_numbers<[1], [0], [0], [1], [0, 0, 1, 1], [], []>} : vector<16x64xbf16>, vector<64x32xbf16>, vector<16x32xf32> -> vector<16x32xf32>
    %21 = arith.addf %18, %20 : vector<16x32xf32>
    %c0_15 = arith.constant 0 : index
    %c0_16 = arith.constant 0 : index
    %22 = vector.load %arg11[%c0_15, %c0_16] : memref<16x32xf32, #tpu.memory_space<vmem>>, vector<16x32xf32>
    tpu.vector_store %arg11[%c0_15, %c0_16], %21 {strides = array<i32>} : memref<16x32xf32, #tpu.memory_space<vmem>>, vector<16x32xf32>,
    %c0_i32_17 = arith.constant 0 : i32
    %23 = arith.cmpi eq, %arg1, %c0_i32_17 : i32
    %24 = arith.extui %23 : i1 to i32
    %c0_i32_18 = arith.constant 0 : i32
    %25 = arith.cmpi ne, %24, %c0_i32_18 : i32
    scf.if %25 {
      %c0_19 = arith.constant 0 : index
      %c0_20 = arith.constant 0 : index
      %26 = vector.load %arg11[%c0_19, %c0_20] : memref<16x32xf32, #tpu.memory_space<vmem>>, vector<16x32xf32>
      %27 = arith.mulf %26, %26 : vector<16x32xf32>
      %cst_21 = arith.constant dense<0.000000e+00> : vector<16xf32>
      %28 = vector.multi_reduction <add>, %27, %cst_21 [1] : vector<16x32xf32> to vector<16xf32>
      %29 = vector.shape_cast %28 : vector<16xf32> to vector<16x1xf32>
      %cst_22 = arith.constant 3.200000e+01 : f32
      %30 = vector.broadcast %cst_22 : f32 to vector<16x1xf32>
      %31 = arith.divf %29, %30 : vector<16x1xf32>
      %c0_23 = arith.constant 0 : index
      %c0_24 = arith.constant 0 : index
      %32 = vector.load %arg5[%c0_23, %c0_24] : memref<1x32xf32, #tpu.memory_space<vmem>>, vector<1x32xf32>
      %cst_25 = arith.constant 9.99999997E-7 : f32
      %33 = vector.broadcast %cst_25 : f32 to vector<16x1xf32>
      %34 = arith.addf %31, %33 : vector<16x1xf32>
      %35 = math.rsqrt %34 : vector<16x1xf32>
      %36 = vector.broadcast %32 : vector<1x32xf32> to vector<16x32xf32>
      %37 = vector.broadcast %35 : vector<16x1xf32> to vector<16x32xf32>
      %38 = arith.mulf %36, %37 : vector<16x32xf32>
      %39 = arith.mulf %26, %38 : vector<16x32xf32>
      %c0_26 = arith.constant 0 : index
      %c0_27 = arith.constant 0 : index
      %40 = vector.load %arg9[%c0_26, %c0_27] : memref<16x32xf32, #tpu.memory_space<vmem>>, vector<16x32xf32>
      tpu.vector_store %arg9[%c0_26, %c0_27], %39 {strides = array<i32>} : memref<16x32xf32, #tpu.memory_space<vmem>>, vector<16x32xf32>,
    } else {
    }
    return
  }
  func.func @transform_0(%arg0: i32, %arg1: i32) -> (i32, i32) {
    %c0_i32 = arith.constant 0 : i32
    %c0_i32_0 = arith.constant 0 : i32
    return %arg0, %c0_i32 : i32, i32
  }
  func.func @transform_1(%arg0: i32, %arg1: i32) -> (i32, i32) {
    %c0_i32 = arith.constant 0 : i32
    %c0_i32_0 = arith.constant 0 : i32
    %c0_i32_1 = arith.constant 0 : i32
    return %c0_i32, %c0_i32_0 : i32, i32
  }
  func.func @transform_2(%arg0: i32, %arg1: i32) -> (i32, i32) {
    %c0_i32 = arith.constant 0 : i32
    %c0_i32_0 = arith.constant 0 : i32
    %c0_i32_1 = arith.constant 0 : i32
    return %c0_i32, %c0_i32_0 : i32, i32
  }
  func.func @transform_3(%arg0: i32, %arg1: i32) -> (i32, i32) {
    %c0_i32 = arith.constant 0 : i32
    %c0_i32_0 = arith.constant 0 : i32
    %c0_i32_1 = arith.constant 0 : i32
    return %c0_i32, %c0_i32_0 : i32, i32
  }
  func.func @transform_4(%arg0: i32, %arg1: i32) -> (i32, i32) {
    %c0_i32 = arith.constant 0 : i32
    %c0_i32_0 = arith.constant 0 : i32
    return %c0_i32, %arg1 : i32, i32
  }
  func.func @transform_5(%arg0: i32, %arg1: i32) -> (i32, i32) {
    %c0_i32 = arith.constant 0 : i32
    %c0_i32_0 = arith.constant 0 : i32
    return %c0_i32, %arg1 : i32, i32
  }
  func.func @transform_6(%arg0: i32, %arg1: i32) -> (i32, i32) {
    %c0_i32 = arith.constant 0 : i32
    %c0_i32_0 = arith.constant 0 : i32
    return %arg1, %c0_i32 : i32, i32
  }
  func.func @transform_7(%arg0: i32, %arg1: i32) -> (i32, i32) {
    %c0_i32 = arith.constant 0 : i32
    %c0_i32_0 = arith.constant 0 : i32
    return %arg0, %c0_i32 : i32, i32
  }
}

</mosaic_0001>

<bundles_post_ra>
// kernel: _lambda_.2
= control target key start
LH: loop header
LB: loop body
LE: loop exit
PB: predicated region body
PF: predicated region fallthrough
CT: control target
= control target key end

     0   :  { %12 = vsyncpa [#allocation5], 0  ;;  %s703_s0 = inlined_call_operand.hbm [shape: f32[16,32], index: 0, kind: input, shape index: {}]   ;;  %s704_s1 = inlined_call_operand.vmem [shape: f32[1,32], index: 1, kind: input, shape index: {}, may-alias: {1,2,3}]   ;;  %s705_s2 = inlined_call_operand.vmem [shape: f32[1,32], index: 2, kind: input, shape index: {}, may-alias: {1,2,3}]   ;;  %s706_s3 = inlined_call_operand.vmem [shape: f32[1,32], index: 3, kind: input, shape index: {}, may-alias: {1,2,3}]   ;;  %s707_s4 = inlined_call_operand.hbm [shape: bf16[32,64], index: 4, kind: input, shape index: {}]   ;;  %s708_s5 = inlined_call_operand.hbm [shape: bf16[32,64], index: 5, kind: input, shape index: {}]   ;;  %s709_s6 = inlined_call_operand.hbm [shape: bf16[64,32], index: 6, kind: input, shape index: {}]   ;;  %s710_s7 = inlined_call_operand.vmem [shape: f32[16,32], index: 7, kind: output, shape index: {}]  }
   0x1   :  { %13 = vsyncpa [#allocation7], 0  ;;  %s38_s26 = sshll.u32 %s707_s4, 4  ;;  %s39_s26 = int_to_ptr.hbm [resolvable:$true] %s38_s26 }
   0x2   :  { %14 = vsyncpa [#allocation10], 0  ;;  %s600_s3 = smov [#allocation6]   ;;  %s19_s30 = sshll.u32 %s703_s0, 4  ;;  %s20_s30 = int_to_ptr.hbm [resolvable:$true] %s19_s30 }
   0x3   :  { %s40_s27 = sshll.u32 %s600_s3, 4  ;;  %s601_s8 = smov 64   ;;  %s41_s27 = int_to_ptr.vmem [resolvable:$true] %s40_s27 }
   0x4   :  { %s602_s9 = smov 4   ;;  %s603_s10 = smov [#allocation4]  }
   0x5   :  { %46 = dma.hbm_to_vmem [thread:$0]  %s39_s26, 256, %s41_s27, [#allocation7], %s601_s8, %s601_s8, %s602_s9  }
   0x6   :  { %s21_s11 = sshll.u32 %s603_s10, 4  ;;  %s604_s12 = smov 128   ;;  %s22_s11 = int_to_ptr.vmem [resolvable:$true] %s21_s11 }
   0x7   :  { %s605_s13 = smov 8   ;;  %s51_s15 = sshll.u32 %s708_s5, 4  ;;  %s52_s15 = int_to_ptr.hbm [resolvable:$true] %s51_s15 }
   0x8   :  { %27 = dma.hbm_to_vmem [thread:$0]  %s20_s30, 256, %s22_s11, [#allocation5], %s604_s12, %s604_s12, %s605_s13  }
   0x9   :  { %s606_s16 = smov [#allocation8]   ;;  %s64_s19 = sshll.u32 %s709_s6, 4  ;;  %s65_s19 = int_to_ptr.hbm [resolvable:$true] %s64_s19 }
   0xa   :  { %s53_s17 = sshll.u32 %s606_s16, 4  ;;  %s607_s20 = smov [#allocation9]   ;;  %s54_s17 = int_to_ptr.vmem [resolvable:$true] %s53_s17 }
   0xb   :  { %59 = dma.hbm_to_vmem [thread:$0]  %s52_s15, 256, %s54_s17, [#allocation7], %s601_s8, %s601_s8, %s602_s9  }
   0xc   :  { %s66_s21 = sshll.u32 %s607_s20, 4  ;;  %s67_s21 = int_to_ptr.vmem [resolvable:$true] %s66_s21 }
   0xd   :  { %72 = dma.hbm_to_vmem [thread:$0]  %s65_s19, 512, %s67_s21, [#allocation10], %s601_s8, %s601_s8, %s602_s9  }
   0xe   :  { %594 = dma.done.wait [#allocation5], 256  }
   0xf   :  { %595 = vsyncadd [#allocation5], 4294967040 }
  0x10   :  { %596 = dma.done.wait [#allocation7], 512  }
  0x11   :  { %597 = vsyncadd [#allocation7], 4294966784 }
  0x12   :  { %598 = dma.done.wait [#allocation10], 512  }
  0x13   :  { %599 = vsyncadd [#allocation10], 4294966784  ;;  %v94_v0 = vld [vmem:[#allocation4] sm:$0xff]  ;;  %vm98_vm0 = vcmask 261120   ;;  %v95_v2 = vld [vmem:[#allocation4 + $0x8] sm:$0xff]  ;;  %v608_v6 = vmov 32.0  }
  0x14   :  { %v96_v1 = vmul.f32 %v94_v0, %v94_v0  ;;  %v97_v4 = vmul.f32 %v95_v2, %v95_v2  ;;  %484 = vrcp.f32 %v608_v6  ;;  %v482_v25 = vld [vmem:[%s704_s1] ss:$0 sm:$0xff]  ;;  %v466_v45 = vld [vmem:[#allocation6 + $0x8] sm:$0xff]  ;;  %v465_v47 = vld [vmem:[#allocation6] sm:$0xff]  ;;  %vm188_vm11 = vcmask 257024  }
  0x15   :  { %v468_v46 = vld [vmem:[#allocation8 + $0x8] sm:$0xff]  ;;  %224 = vmatpush.bf16.msra.mxu0 %v466_v45  ;;  %v467_v48 = vld [vmem:[#allocation8] sm:$0xff]  ;;  %v470_v45 = vld [vmem:[#allocation9 + $0x8] sm:$0xff] }
  0x16   :  { %v99_v3 = vsel %vm98_vm0, %v96_v1, 0.0  ;;  %v102_v5 = vsel %vm98_vm0, %v97_v4, 0.0  ;;  %254 = vmatpush.bf16.msra.mxu1 %v468_v46  ;;  %v483_v58 = vld [vmem:[%s705_s2] ss:$0 sm:$0xff] }
  0x17   :  { %100 = vadd.xlane.f32.xlu0 %v99_v3 }
  0x19   :  { %225 = vmatpush.bf16.msra.mxu0 %v465_v47 }
  0x1a   :  { %v485_v7 = vpop.eup %484  ;;  %255 = vmatpush.bf16.msra.mxu1 %v467_v48 }
  0x1b   :  { %v106_v8 = vmul.f32 32.0, %v485_v7  ;;  %vm110_vm1 = vweird.f32 %v485_v7 }
  0x1d   :  { %v107_v9 = vsub.f32 1.0, %v106_v8 }
  0x1f   :  { %103 = vadd.xlane.f32.xlu0 %v102_v5  ;;  %v108_v10 = vmul.f32 %v485_v7, %v107_v9 }
  0x21   :  { %v109_v11 = vadd.f32 %v485_v7, %v108_v10 }
  0x23   :  { %v111_v12 = vsel %vm110_vm1, %v485_v7, %v109_v11 }
  0x8a   :  { %v101_v13 = vpop.xlane.xlu0 %100 }
  0x8b   :  { %v112_v14 = vmul.f32 %v111_v12, %v101_v13 }
  0x8d   :  { %v115_v15 = vadd.f32 1e-06, %v112_v14 }
  0x8f   :  { %486 = vrsqrt.f32 %v115_v15  ;;  %vm123_vm3 = vweird.f32 %v115_v15 }
  0x92   :  { %v104_v16 = vpop.xlane.xlu0 %103 }
  0x93   :  { %v113_v17 = vmul.f32 %v111_v12, %v104_v16 }
  0x95   :  { %v487_v18 = vpop.eup %486  ;;  %v116_v19 = vadd.f32 1e-06, %v113_v17 }
  0x96   :  { %v118_v20 = vmul.f32 %v487_v18, %v115_v15  ;;  %vm124_vm2 = vweird.f32 %v487_v18 }
  0x97   :  { %488 = vrsqrt.f32 %v116_v19  ;;  %vm125_vm4 = vmor %vm123_vm3, %vm124_vm2  ;;  %vm133_vm6 = vweird.f32 %v116_v19 }
  0x98   :  { %v119_v21 = vmul.f32 %v487_v18, %v118_v20 }
  0x9a   :  { %v120_v22 = vmul.f32 0.5, %v119_v21 }
  0x9c   :  { %v121_v23 = vsub.f32 1.5, %v120_v22 }
  0x9d   :  { %v489_v24 = vpop.eup %488 }
  0x9e   :  { %v122_v26 = vmul.f32 %v487_v18, %v121_v23  ;;  %v128_v27 = vmul.f32 %v489_v24, %v116_v19  ;;  %vm134_vm5 = vweird.f32 %v489_v24 }
  0x9f   :  { %vm135_vm7 = vmor %vm133_vm6, %vm134_vm5 }
  0xa0   :  { %v126_v28 = vsel %vm125_vm4, %v487_v18, %v122_v26  ;;  %v129_v29 = vmul.f32 %v489_v24, %v128_v27 }
  0xa1   :  { %v140_v30 = vmul.f32 %v482_v25, %v126_v28 }
  0xa2   :  { %v130_v31 = vmul.f32 0.5, %v129_v29 }
  0xa3   :  { %v142_v32 = vmul.f32 %v140_v30, %v94_v0  ;;  %v472_v30 = vld [vmem:[#allocation9 + $0x18] sm:$0xff] }
  0xa4   :  { %v131_v33 = vsub.f32 1.5, %v130_v31  ;;  %395 = vmatpush.bf16.msra.mxu2 %v472_v30 }
  0xa5   :  { %v146_v34 = vmul.f32 %v142_v32, %v142_v32  ;;  %144 = vst.msk [vmem:[#allocation3] sm:$0xff] %vm98_vm0, %v142_v32 }
  0xa6   :  { %v132_v35 = vmul.f32 %v489_v24, %v131_v33 }
  0xa7   :  { %v148_v36 = vsel %vm98_vm0, %v146_v34, 0.0 }
  0xa8   :  { %v136_v37 = vsel %vm135_vm7, %v489_v24, %v132_v35  ;;  %149 = vadd.xlane.f32.xlu1 %v148_v36 }
  0xa9   :  { %v141_v38 = vmul.f32 %v482_v25, %v136_v37 }
  0xab   :  { %v143_v39 = vmul.f32 %v141_v38, %v95_v2  ;;  %v471_v38 = vld [vmem:[#allocation9 + $0x10] sm:$0xff] }
  0xac   :  { %396 = vmatpush.bf16.msra.mxu2 %v471_v38 }
  0xad   :  { %v147_v40 = vmul.f32 %v143_v39, %v143_v39  ;;  %145 = vst.msk [vmem:[#allocation3 + $0x8] sm:$0xff] %vm98_vm0, %v143_v39 }
  0xaf   :  { %v151_v41 = vsel %vm98_vm0, %v147_v40, 0.0 }
  0xb0   :  { %152 = vadd.xlane.f32.xlu1 %v151_v41  ;;  %397 = vmatpush.bf16.msra.mxu2 %v470_v45 }
 0x11b   :  { %v150_v42 = vpop.xlane.xlu1 %149 }
 0x11c   :  { %v154_v43 = vmul.f32 %v150_v42, %v111_v12 }
 0x11e   :  { %v157_v44 = vadd.f32 1e-06, %v154_v43 }
 0x120   :  { %490 = vrsqrt.f32 %v157_v44  ;;  %vm165_vm9 = vweird.f32 %v157_v44 }
 0x123   :  { %v153_v49 = vpop.xlane.xlu1 %152 }
 0x124   :  { %v155_v50 = vmul.f32 %v153_v49, %v111_v12 }
 0x126   :  { %v491_v51 = vpop.eup %490  ;;  %v158_v52 = vadd.f32 1e-06, %v155_v50  ;;  %v469_v50 = vld [vmem:[#allocation9] sm:$0xff] }
 0x127   :  { %v160_v53 = vmul.f32 %v491_v51, %v157_v44  ;;  %vm166_vm8 = vweird.f32 %v491_v51  ;;  %398 = vmatpush.bf16.msra.mxu2 %v469_v50 }
 0x128   :  { %492 = vrsqrt.f32 %v158_v52  ;;  %vm167_vm10 = vmor %vm165_vm9, %vm166_vm8  ;;  %vm175_vm13 = vweird.f32 %v158_v52  ;;  %vm387_vm8 = vcmask 523264  }
 0x129   :  { %v161_v54 = vmul.f32 %v491_v51, %v160_v53 }
 0x12b   :  { %v162_v55 = vmul.f32 0.5, %v161_v54 }
 0x12d   :  { %v163_v56 = vsub.f32 1.5, %v162_v55 }
 0x12e   :  { %v493_v57 = vpop.eup %492 }
 0x12f   :  { %v164_v59 = vmul.f32 %v491_v51, %v163_v56  ;;  %v170_v60 = vmul.f32 %v493_v57, %v158_v52  ;;  %vm176_vm12 = vweird.f32 %v493_v57 }
 0x130   :  { %vm177_vm14 = vmor %vm175_vm13, %vm176_vm12 }
 0x131   :  { %v168_v61 = vsel %vm167_vm10, %v491_v51, %v164_v59  ;;  %v171_v62 = vmul.f32 %v493_v57, %v170_v60 }
 0x132   :  { %v182_v63 = vmul.f32 %v483_v58, %v168_v61 }
 0x133   :  { %v172_v0 = vmul.f32 0.5, %v171_v62 }
 0x134   :  { %v184_v1 = vmul.f32 %v182_v63, %v142_v32 }
 0x135   :  { %v173_v2 = vsub.f32 1.5, %v172_v0 }
 0x136   :  { %v186_v3 = vpack.c.bf16 %v184_v1, %v184_v1 }
 0x137   :  { %v174_v4 = vmul.f32 %v493_v57, %v173_v2 }
 0x138   :  { %189 = vst.msk [vmem:[#allocation2] sm:$0xf] %vm188_vm11, %v186_v3 }
 0x139   :  { %v178_v5 = vsel %vm177_vm14, %v493_v57, %v174_v4 }
 0x13a   :  { %v183_v6 = vmul.f32 %v483_v58, %v178_v5 }
 0x13c   :  { %v185_v7 = vmul.f32 %v183_v6, %v143_v39 }
 0x13e   :  { %v187_v8 = vpack.c.bf16 %v185_v7, %v185_v7 }
 0x140   :  { %190 = vst.msk [vmem:[#allocation2 + $0x4] sm:$0xf] %vm188_vm11, %v187_v8 }
 0x147   :  { %v464_v9 = vld [vmem:[#allocation2] sm:$0xff] }
 0x148   :  { %435 = vmatmul.msk.bf16.vlgmr.msra.gmra.mxu0 %vm98_vm0, %v464_v9  ;;  %444 = vmatmul.msk.bf16.vlgmr.msra.gmra.mxu1 %vm98_vm0, %v464_v9 }
 0x1c5   :  { %v675_v10 = vpop.f32.mrf.mxu1 }
 0x1c6   :  { %v678_v11 = vmul.f32 0.70710677, %v675_v10 }
 0x1c8   :  { %v266_v12 = vmul.f32 %v678_v11, %v678_v11 }
 0x1ca   :  { %v267_v13 = vmin.f32 %v266_v12, 16.0 }
 0x1cc   :  { %v268_v14 = vmul.f32 2.1237322e-06, %v267_v13  ;;  %v279_v15 = vmul.f32 3.8918573e-05, %v267_v13 }
 0x1cd   :  { %v682_v16 = vpop.f32.mrf.mxu1 }
 0x1ce   :  { %v269_v17 = vadd.f32 0.00028619796, %v268_v14  ;;  %v280_v18 = vadd.f32 0.001143296, %v279_v15  ;;  %v685_v19 = vmul.f32 0.70710677, %v682_v16 }
 0x1d0   :  { %v270_v20 = vmul.f32 %v269_v17, %v267_v13  ;;  %v281_v21 = vmul.f32 %v280_v18, %v267_v13  ;;  %v306_v22 = vmul.f32 %v685_v19, %v685_v19 }
 0x1d2   :  { %v282_v23 = vadd.f32 0.014752088, %v281_v21  ;;  %v307_v24 = vmin.f32 %v306_v22, 16.0  ;;  %v271_v25 = vadd.f32 0.0036580483, %v270_v20  ;;  %v227_v22 = vpop.f32.mrf.mxu0 }
 0x1d4   :  { %v283_v26 = vmul.f32 %v282_v23, %v267_v13  ;;  %v308_v27 = vmul.f32 2.1237322e-06, %v307_v24  ;;  %v319_v28 = vmul.f32 3.8918573e-05, %v307_v24  ;;  %v272_v33 = vmul.f32 %v271_v25, %v267_v13 }
 0x1d6   :  { %v284_v29 = vadd.f32 0.112945676, %v283_v26  ;;  %v309_v31 = vadd.f32 0.00028619796, %v308_v27  ;;  %v320_v32 = vadd.f32 0.001143296, %v319_v28 }
 0x1d7   :  { %v273_v40 = vadd.f32 0.05243302, %v272_v33  ;;  %v262_v28 = vmul.f32 0.5, %v675_v10 }
 0x1d8   :  { %v285_v34 = vmul.f32 %v284_v29, %v267_v13  ;;  %v310_v35 = vmul.f32 %v309_v31, %v307_v24  ;;  %v321_v36 = vmul.f32 %v320_v32, %v307_v24  ;;  %v263_v31 = vmul.f32 0.5, %v682_v16 }
 0x1d9   :  { %v274_v47 = vmul.f32 %v273_v40, %v267_v13  ;;  %v354_v40 = vld [vmem:[#allocation3 + $0x8] sm:$0xff] }
 0x1da   :  { %v286_v37 = vadd.f32 0.4994258, %v285_v34  ;;  %v322_v39 = vadd.f32 0.014752088, %v321_v36  ;;  %v311_v42 = vadd.f32 0.0036580483, %v310_v35  ;;  %v229_v34 = vpop.f32.mrf.mxu0 }
 0x1db   :  { %v275_v52 = vadd.f32 0.18741608, %v274_v47 }
 0x1dc   :  { %v287_v41 = vmul.f32 %v286_v37, %v267_v13  ;;  %v323_v43 = vmul.f32 %v322_v39, %v307_v24  ;;  %v312_v48 = vmul.f32 %v311_v42, %v307_v24 }
 0x1dd   :  { %v276_v58 = vmul.f32 %v275_v52, %v267_v13 }
 0x1de   :  { %v288_v44 = vadd.f32 1.0, %v287_v41  ;;  %v324_v46 = vadd.f32 0.112945676, %v323_v43  ;;  %v313_v53 = vadd.f32 0.05243302, %v312_v48 }
 0x1df   :  { %v277_v0 = vadd.f32 1.1283791, %v276_v58 }
 0x1e0   :  { %494 = vrcp.f32 %v288_v44  ;;  %v325_v49 = vmul.f32 %v324_v46, %v307_v24  ;;  %v314_v59 = vmul.f32 %v313_v53, %v307_v24  ;;  %v300_v61 = vand.u32 2147483648, %v288_v44 }
 0x1e1   :  { %v298_v63 = vand.u32 2147483647, %v288_v44  ;;  %vm294_vm1 = vweird.f32 %v288_v44  ;;  %v278_v6 = vmul.f32 %v277_v0, %v678_v11 }
 0x1e2   :  { %v326_v51 = vadd.f32 0.4994258, %v325_v49  ;;  %v315_v1 = vadd.f32 0.18741608, %v314_v59  ;;  %v301_v3 = vor.u32 1.1754944e-38, %v300_v61 }
 0x1e3   :  { %vm299_vm3 = vcmp.eq.f32.partialorder %v298_v63, 8.507059e+37 }
 0x1e4   :  { %v327_v54 = vmul.f32 %v326_v51, %v307_v24  ;;  %v316_v8 = vmul.f32 %v315_v1, %v307_v24 }
 0x1e6   :  { %v495_v55 = vpop.eup %494  ;;  %v328_v57 = vadd.f32 1.0, %v327_v54  ;;  %v317_v15 = vadd.f32 1.1283791, %v316_v8 }
 0x1e7   :  { %v290_v56 = vmul.f32 %v495_v55, %v288_v44  ;;  %vm295_vm15 = vweird.f32 %v495_v55 }
 0x1e8   :  { %496 = vrcp.f32 %v328_v57  ;;  %vm296_vm2 = vmor %vm294_vm1, %vm295_vm15  ;;  %v340_v14 = vand.u32 2147483648, %v328_v57  ;;  %v338_v18 = vand.u32 2147483647, %v328_v57  ;;  %vm334_vm5 = vweird.f32 %v328_v57 }
 0x1e9   :  { %v291_v60 = vsub.f32 1.0, %v290_v56  ;;  %v318_v25 = vmul.f32 %v317_v15, %v685_v19  ;;  %v353_v19 = vld [vmem:[#allocation3] sm:$0xff] }
 0x1ea   :  { %v341_v23 = vor.u32 1.1754944e-38, %v340_v14  ;;  %vm339_vm7 = vcmp.eq.f32.partialorder %v338_v18, 8.507059e+37 }
 0x1eb   :  { %v292_v62 = vmul.f32 %v495_v55, %v291_v60 }
 0x1ed   :  { %v293_v2 = vadd.f32 %v495_v55, %v292_v62 }
 0x1ee   :  { %v497_v4 = vpop.eup %496 }
 0x1ef   :  { %v297_v5 = vsel %vm296_vm2, %v495_v55, %v293_v2  ;;  %v330_v9 = vmul.f32 %v497_v4, %v328_v57  ;;  %vm335_vm4 = vweird.f32 %v497_v4 }
 0x1f0   :  { %v302_v7 = vsel %vm299_vm3, %v301_v3, %v297_v5  ;;  %vm336_vm6 = vmor %vm334_vm5, %vm335_vm4 }
 0x1f1   :  { %v303_v12 = vmul.f32 %v302_v7, %v278_v6  ;;  %v331_v13 = vsub.f32 1.0, %v330_v9 }
 0x1f3   :  { %v332_v17 = vmul.f32 %v497_v4, %v331_v13  ;;  %v445_v20 = vclamps-f32 %v303_v12, 1.0 }
 0x1f5   :  { %v333_v21 = vadd.f32 %v497_v4, %v332_v17  ;;  %v346_v24 = vadd.f32 1.0, %v445_v20 }
 0x1f7   :  { %v337_v26 = vsel %vm336_vm6, %v497_v4, %v333_v21  ;;  %v348_v30 = vmul.f32 %v346_v24, %v262_v28 }
 0x1f8   :  { %v342_v11 = vsel %vm339_vm7, %v341_v23, %v337_v26 }
 0x1f9   :  { %v343_v27 = vmul.f32 %v342_v11, %v318_v25  ;;  %v350_v35 = vmul.f32 %v348_v30, %v227_v22 }
 0x1fb   :  { %v446_v29 = vclamps-f32 %v343_v27, 1.0 }
 0x1fd   :  { %v347_v32 = vadd.f32 1.0, %v446_v29 }
 0x1ff   :  { %v349_v33 = vmul.f32 %v347_v32, %v263_v31 }
 0x201   :  { %v351_v36 = vmul.f32 %v349_v33, %v229_v34 }
 0x203   :  { %v352_v37 = vpack.c.bf16 %v351_v36, %v350_v35 }
 0x205   :  { %463 = vmatmul.msk.bf16.vlgmr.msra.gmra.mxu2 %vm387_vm8, %v352_v37 }
 0x288   :  { %v400_v38 = vpop.f32.mrf.mxu2 }
 0x289   :  { %v405_v39 = vadd.f32 %v400_v38, %v353_v19 }
 0x28b   :  { %407 = vst.msk [vmem:[#allocation3] sm:$0xff] %vm98_vm0, %v405_v39 }
 0x290   :  { %v402_v41 = vpop.f32.mrf.mxu2 }
 0x291   :  { %v406_v10 = vadd.f32 %v402_v41, %v354_v40 }
 0x292   :  { %v412_v42 = vld [vmem:[#allocation3] sm:$0xff] }
 0x293   :  { %414 = vst.msk [vmem:[%s710_s7] sm:$0xff] %vm98_vm0, %v412_v42 }
 0x294   :  { %408 = vst.msk [vmem:[#allocation3 + $0x8] sm:$0xff] %vm98_vm0, %v406_v10 }
 0x29b   :  { %v413_v16 = vld [vmem:[#allocation3 + $0x8] sm:$0xff] }
 0x29c   :  { %415 = vst.msk [vmem:[%s710_s7 + $0x8] sm:$0xff] %vm98_vm0, %v413_v16 }
 0x29d   :  { %420 = vsyncpa [#allocation5], 1 }
 0x29e   :  { %421 = vsyncpa [#allocation7], 1 }
 0x29f   :  { %422 = vsyncpa [#allocation10], 1 }

// kernel: _lambda_.3
= control target key start
LH: loop header
LB: loop body
LE: loop exit
PB: predicated region body
PF: predicated region fallthrough
CT: control target
= control target key end

     0   :  { %12 = vsyncpa [#allocation5], 0  ;;  %s714_s0 = inlined_call_operand.vmem [shape: f32[16,32], index: 0, kind: input, shape index: {}]   ;;  %s715_s1 = inlined_call_operand.vmem [shape: f32[1,32], index: 1, kind: input, shape index: {}, may-alias: {1,2,3}]   ;;  %s716_s2 = inlined_call_operand.vmem [shape: f32[1,32], index: 2, kind: input, shape index: {}, may-alias: {1,2,3}]   ;;  %s717_s3 = inlined_call_operand.vmem [shape: f32[1,32], index: 3, kind: input, shape index: {}, may-alias: {1,2,3}]   ;;  %s718_s4 = inlined_call_operand.hbm [shape: bf16[32,64], index: 4, kind: input, shape index: {}]   ;;  %s719_s5 = inlined_call_operand.hbm [shape: bf16[32,64], index: 5, kind: input, shape index: {}]   ;;  %s720_s6 = inlined_call_operand.hbm [shape: bf16[64,32], index: 6, kind: input, shape index: {}]   ;;  %s721_s7 = inlined_call_operand.hbm [shape: f32[16,32], index: 7, kind: output, shape index: {}]  }
   0x1   :  { %13 = vsyncpa [#allocation8], 0 }
   0x2   :  { %14 = vsyncpa [#allocation6], 0  ;;  %s40_s25 = sshll.u32 %s719_s5, 4  ;;  %s605_s26 = smov [#allocation7]   ;;  %s41_s25 = int_to_ptr.hbm [resolvable:$true] %s40_s25 }
   0x3   :  { %s42_s27 = sshll.u32 %s605_s26, 4  ;;  %s27_s30 = sshll.u32 %s718_s4, 4  ;;  %s43_s27 = int_to_ptr.vmem [resolvable:$true] %s42_s27  ;;  %s28_s30 = int_to_ptr.hbm [resolvable:$true] %s27_s30 }
   0x4   :  { %s606_s8 = smov 64   ;;  %s607_s9 = smov 4  }
   0x5   :  { %48 = dma.hbm_to_vmem [thread:$0]  %s41_s25, 256, %s43_s27, [#allocation8], %s606_s8, %s606_s8, %s607_s9  }
   0x6   :  { %s608_s10 = smov [#allocation4]   ;;  %s53_s14 = sshll.u32 %s720_s6, 4  ;;  %s54_s14 = int_to_ptr.hbm [resolvable:$true] %s53_s14 }
   0x7   :  { %s29_s11 = sshll.u32 %s608_s10, 4  ;;  %s609_s5 = smov [#allocation9]   ;;  %s30_s11 = int_to_ptr.vmem [resolvable:$true] %s29_s11 }
   0x8   :  { %35 = dma.hbm_to_vmem [thread:$0]  %s28_s30, 256, %s30_s11, [#allocation5], %s606_s8, %s606_s8, %s607_s9  }
   0x9   :  { %s55_s15 = sshll.u32 %s609_s5, 4  ;;  %s56_s15 = int_to_ptr.vmem [resolvable:$true] %s55_s15 }
   0xa   :  { %61 = dma.hbm_to_vmem [thread:$0]  %s54_s14, 512, %s56_s15, [#allocation8], %s606_s8, %s606_s8, %s607_s9  }
   0xb   :  { %599 = dma.done.wait [#allocation5], 256  }
   0xc   :  { %600 = vsyncadd [#allocation5], 4294967040 }
   0xd   :  { %601 = dma.done.wait [#allocation8], 768  }
   0xe   :  { %602 = vsyncadd [#allocation8], 4294966528  ;;  %v79_v0 = vld [vmem:[%s714_s0] sm:$0xff]  ;;  %vm81_vm0 = vcmask 261120   ;;  %v80_v2 = vld [vmem:[%s714_s0 + $0x8] sm:$0xff]  ;;  %v610_v6 = vmov 32.0  }
   0xf   :  { %v84_v1 = vmul.f32 %v79_v0, %v79_v0  ;;  %82 = vst.msk [vmem:[#allocation3] sm:$0xff] %vm81_vm0, %v79_v0  ;;  %v85_v4 = vmul.f32 %v80_v2, %v80_v2  ;;  %489 = vrcp.f32 %v610_v6  ;;  %v471_v16 = vld [vmem:[#allocation4 + $0x8] sm:$0xff]  ;;  %v473_v17 = vld [vmem:[#allocation7 + $0x8] sm:$0xff]  ;;  %v470_v18 = vld [vmem:[#allocation4] sm:$0xff]  ;;  %vm133_vm5 = vcmask 257024   ;;  %s611_s20 = smov [#allocation10]  }
  0x10   :  { %83 = vst.msk [vmem:[#allocation3 + $0x8] sm:$0xff] %vm81_vm0, %v80_v2  ;;  %169 = vmatpush.bf16.msra.mxu0 %v471_v16  ;;  %199 = vmatpush.bf16.msra.mxu1 %v473_v17  ;;  %v472_v19 = vld [vmem:[#allocation7] sm:$0xff]  ;;  %v487_v29 = vld [vmem:[%s716_s2] ss:$0 sm:$0xff]  ;;  %s412_s21 = sshll.u32 %s611_s20, 4  ;;  %s414_s23 = sshll.u32 %s721_s7, 4  ;;  %s413_s21 = int_to_ptr.vmem [resolvable:$true] %s412_s21  ;;  %s415_s23 = int_to_ptr.hbm [resolvable:$true] %s414_s23 }
  0x11   :  { %v86_v3 = vsel %vm81_vm0, %v84_v1, 0.0  ;;  %v89_v5 = vsel %vm81_vm0, %v85_v4, 0.0  ;;  %v477_v1 = vld [vmem:[#allocation9 + $0x18] sm:$0xff]  ;;  %v475_v17 = vld [vmem:[#allocation9 + $0x8] sm:$0xff]  ;;  %s612_s1 = smov 128   ;;  %s613_s24 = smov 8  }
  0x12   :  { %87 = vadd.xlane.f32.xlu0 %v86_v3  ;;  %340 = vmatpush.bf16.msra.mxu2 %v477_v1 }
  0x14   :  { %170 = vmatpush.bf16.msra.mxu0 %v470_v18  ;;  %200 = vmatpush.bf16.msra.mxu1 %v472_v19 }
  0x15   :  { %v490_v7 = vpop.eup %489 }
  0x16   :  { %v93_v8 = vmul.f32 32.0, %v490_v7  ;;  %vm97_vm1 = vweird.f32 %v490_v7 }
  0x18   :  { %v94_v9 = vsub.f32 1.0, %v93_v8 }
  0x1a   :  { %90 = vadd.xlane.f32.xlu0 %v89_v5  ;;  %v95_v10 = vmul.f32 %v490_v7, %v94_v9  ;;  %v476_v9 = vld [vmem:[#allocation9 + $0x10] sm:$0xff] }
  0x1b   :  { %341 = vmatpush.bf16.msra.mxu2 %v476_v9 }
  0x1c   :  { %v96_v11 = vadd.f32 %v490_v7, %v95_v10 }
  0x1e   :  { %v673_v12 = vsel %vm97_vm1, %v490_v7, %v96_v11 }
  0x1f   :  { %342 = vmatpush.bf16.msra.mxu2 %v475_v17 }
  0x85   :  { %v88_v13 = vpop.xlane.xlu0 %87 }
  0x86   :  { %v99_v14 = vmul.f32 %v673_v12, %v88_v13 }
  0x88   :  { %v102_v15 = vadd.f32 1e-06, %v99_v14 }
  0x8a   :  { %491 = vrsqrt.f32 %v102_v15  ;;  %vm110_vm3 = vweird.f32 %v102_v15 }
  0x8d   :  { %v91_v20 = vpop.xlane.xlu0 %90 }
  0x8e   :  { %v100_v21 = vmul.f32 %v673_v12, %v91_v20 }
  0x90   :  { %v492_v22 = vpop.eup %491  ;;  %v103_v23 = vadd.f32 1e-06, %v100_v21 }
  0x91   :  { %v105_v24 = vmul.f32 %v492_v22, %v102_v15  ;;  %vm111_vm2 = vweird.f32 %v492_v22 }
  0x92   :  { %493 = vrsqrt.f32 %v103_v23  ;;  %vm112_vm4 = vmor %vm110_vm3, %vm111_vm2  ;;  %vm120_vm7 = vweird.f32 %v103_v23  ;;  %vm332_vm2 = vcmask 523264  }
  0x93   :  { %v106_v25 = vmul.f32 %v492_v22, %v105_v24 }
  0x95   :  { %v107_v26 = vmul.f32 0.5, %v106_v25 }
  0x97   :  { %v108_v27 = vsub.f32 1.5, %v107_v26 }
  0x98   :  { %v494_v28 = vpop.eup %493 }
  0x99   :  { %v109_v30 = vmul.f32 %v492_v22, %v108_v27  ;;  %v115_v31 = vmul.f32 %v494_v28, %v103_v23  ;;  %vm121_vm6 = vweird.f32 %v494_v28 }
  0x9a   :  { %vm122_vm8 = vmor %vm120_vm7, %vm121_vm6 }
  0x9b   :  { %v113_v32 = vsel %vm112_vm4, %v492_v22, %v109_v30  ;;  %v116_v33 = vmul.f32 %v494_v28, %v115_v31  ;;  %v474_v22 = vld [vmem:[#allocation9] sm:$0xff] }
  0x9c   :  { %v127_v34 = vmul.f32 %v487_v29, %v113_v32  ;;  %343 = vmatpush.bf16.msra.mxu2 %v474_v22 }
  0x9d   :  { %v117_v35 = vmul.f32 0.5, %v116_v33 }
  0x9e   :  { %v129_v36 = vmul.f32 %v127_v34, %v79_v0 }
  0x9f   :  { %v118_v37 = vsub.f32 1.5, %v117_v35 }
  0xa0   :  { %v131_v38 = vpack.c.bf16 %v129_v36, %v129_v36 }
  0xa1   :  { %v119_v39 = vmul.f32 %v494_v28, %v118_v37 }
  0xa2   :  { %134 = vst.msk [vmem:[#allocation2] sm:$0xf] %vm133_vm5, %v131_v38 }
  0xa3   :  { %v123_v40 = vsel %vm122_vm8, %v494_v28, %v119_v39 }
  0xa4   :  { %v128_v41 = vmul.f32 %v487_v29, %v123_v40 }
  0xa6   :  { %v130_v42 = vmul.f32 %v128_v41, %v80_v2 }
  0xa8   :  { %v132_v43 = vpack.c.bf16 %v130_v42, %v130_v42 }
  0xaa   :  { %135 = vst.msk [vmem:[#allocation2 + $0x4] sm:$0xf] %vm133_vm5, %v132_v43 }
  0xb1   :  { %v469_v44 = vld [vmem:[#allocation2] sm:$0xff] }
  0xb2   :  { %440 = vmatmul.msk.bf16.vlgmr.msra.gmra.mxu0 %vm81_vm0, %v469_v44  ;;  %449 = vmatmul.msk.bf16.vlgmr.msra.gmra.mxu1 %vm81_vm0, %v469_v44 }
 0x12f   :  { %v682_v45 = vpop.f32.mrf.mxu1 }
 0x130   :  { %v685_v46 = vmul.f32 0.70710677, %v682_v45 }
 0x132   :  { %v211_v47 = vmul.f32 %v685_v46, %v685_v46 }
 0x134   :  { %v212_v48 = vmin.f32 %v211_v47, 16.0 }
 0x136   :  { %v213_v49 = vmul.f32 2.1237322e-06, %v212_v48  ;;  %v224_v50 = vmul.f32 3.8918573e-05, %v212_v48 }
 0x137   :  { %v689_v51 = vpop.f32.mrf.mxu1 }
 0x138   :  { %v214_v52 = vadd.f32 0.00028619796, %v213_v49  ;;  %v225_v53 = vadd.f32 0.001143296, %v224_v50  ;;  %v692_v54 = vmul.f32 0.70710677, %v689_v51 }
 0x13a   :  { %v215_v55 = vmul.f32 %v214_v52, %v212_v48  ;;  %v226_v56 = vmul.f32 %v225_v53, %v212_v48  ;;  %v251_v57 = vmul.f32 %v692_v54, %v692_v54 }
 0x13c   :  { %v227_v58 = vadd.f32 0.014752088, %v226_v56  ;;  %v252_v59 = vmin.f32 %v251_v57, 16.0  ;;  %v216_v60 = vadd.f32 0.0036580483, %v215_v55 }
 0x13e   :  { %v228_v61 = vmul.f32 %v227_v58, %v212_v48  ;;  %v253_v62 = vmul.f32 2.1237322e-06, %v252_v59  ;;  %v264_v63 = vmul.f32 3.8918573e-05, %v252_v59  ;;  %v217_v4 = vmul.f32 %v216_v60, %v212_v48  ;;  %v172_v58 = vpop.f32.mrf.mxu0 }
 0x140   :  { %v229_v0 = vadd.f32 0.112945676, %v228_v61  ;;  %v254_v2 = vadd.f32 0.00028619796, %v253_v62  ;;  %v265_v3 = vadd.f32 0.001143296, %v264_v63 }
 0x141   :  { %v218_v11 = vadd.f32 0.05243302, %v217_v4 }
 0x142   :  { %v230_v5 = vmul.f32 %v229_v0, %v212_v48  ;;  %v255_v6 = vmul.f32 %v254_v2, %v252_v59  ;;  %v266_v7 = vmul.f32 %v265_v3, %v252_v59  ;;  %v207_v0 = vmul.f32 0.5, %v682_v45 }
 0x143   :  { %v219_v19 = vmul.f32 %v218_v11, %v212_v48  ;;  %v208_v3 = vmul.f32 0.5, %v689_v51 }
 0x144   :  { %v231_v8 = vadd.f32 0.4994258, %v230_v5  ;;  %v267_v10 = vadd.f32 0.014752088, %v266_v7  ;;  %v256_v14 = vadd.f32 0.0036580483, %v255_v6 }
 0x145   :  { %v220_v24 = vadd.f32 0.18741608, %v219_v19 }
 0x146   :  { %v232_v13 = vmul.f32 %v231_v8, %v212_v48  ;;  %v268_v15 = vmul.f32 %v267_v10, %v252_v59  ;;  %v257_v20 = vmul.f32 %v256_v14, %v252_v59  ;;  %v174_v6 = vpop.f32.mrf.mxu0 }
 0x147   :  { %v221_v30 = vmul.f32 %v220_v24, %v212_v48 }
 0x148   :  { %v233_v16 = vadd.f32 1.0, %v232_v13  ;;  %v269_v18 = vadd.f32 0.112945676, %v268_v15  ;;  %v258_v25 = vadd.f32 0.05243302, %v257_v20  ;;  %v299_v13 = vld [vmem:[#allocation3 + $0x8] sm:$0xff] }
 0x149   :  { %v222_v36 = vadd.f32 1.1283791, %v221_v30 }
 0x14a   :  { %495 = vrcp.f32 %v233_v16  ;;  %v270_v21 = vmul.f32 %v269_v18, %v252_v59  ;;  %v259_v31 = vmul.f32 %v258_v25, %v252_v59  ;;  %v245_v33 = vand.u32 2147483648, %v233_v16 }
 0x14b   :  { %v243_v35 = vand.u32 2147483647, %v233_v16  ;;  %vm239_vm10 = vweird.f32 %v233_v16  ;;  %v223_v42 = vmul.f32 %v222_v36, %v685_v46 }
 0x14c   :  { %v271_v23 = vadd.f32 0.4994258, %v270_v21  ;;  %v260_v37 = vadd.f32 0.18741608, %v259_v31  ;;  %v246_v39 = vor.u32 1.1754944e-38, %v245_v33 }
 0x14d   :  { %vm244_vm12 = vcmp.eq.f32.partialorder %v243_v35, 8.507059e+37 }
 0x14e   :  { %v272_v26 = vmul.f32 %v271_v23, %v252_v59  ;;  %v261_v44 = vmul.f32 %v260_v37, %v252_v59 }
 0x150   :  { %v496_v27 = vpop.eup %495  ;;  %v273_v29 = vadd.f32 1.0, %v272_v26  ;;  %v262_v52 = vadd.f32 1.1283791, %v261_v44 }
 0x151   :  { %v235_v28 = vmul.f32 %v496_v27, %v233_v16  ;;  %vm240_vm9 = vweird.f32 %v496_v27 }
 0x152   :  { %497 = vrcp.f32 %v273_v29  ;;  %vm241_vm11 = vmor %vm239_vm10, %vm240_vm9  ;;  %v285_v50 = vand.u32 2147483648, %v273_v29  ;;  %v283_v55 = vand.u32 2147483647, %v273_v29  ;;  %vm279_vm14 = vweird.f32 %v273_v29 }
 0x153   :  { %v236_v32 = vsub.f32 1.0, %v235_v28  ;;  %v263_v61 = vmul.f32 %v262_v52, %v692_v54  ;;  %v298_v54 = vld [vmem:[#allocation3] sm:$0xff] }
 0x154   :  { %v286_v60 = vor.u32 1.1754944e-38, %v285_v50  ;;  %vm284_vm1 = vcmp.eq.f32.partialorder %v283_v55, 8.507059e+37 }
 0x155   :  { %v237_v34 = vmul.f32 %v496_v27, %v236_v32  ;;  %v488_v32 = vld [vmem:[%s717_s3] ss:$0 sm:$0xff] }
 0x157   :  { %v238_v38 = vadd.f32 %v496_v27, %v237_v34 }
 0x158   :  { %v498_v40 = vpop.eup %497 }
 0x159   :  { %v242_v41 = vsel %vm241_vm11, %v496_v27, %v238_v38  ;;  %v275_v47 = vmul.f32 %v498_v40, %v273_v29  ;;  %vm280_vm13 = vweird.f32 %v498_v40 }
 0x15a   :  { %v247_v43 = vsel %vm244_vm12, %v246_v39, %v242_v41  ;;  %vm281_vm15 = vmor %vm279_vm14, %vm280_vm13 }
 0x15b   :  { %v248_v48 = vmul.f32 %v247_v43, %v223_v42  ;;  %v276_v49 = vsub.f32 1.0, %v275_v47 }
 0x15d   :  { %v277_v53 = vmul.f32 %v498_v40, %v276_v49  ;;  %v450_v56 = vclamps-f32 %v248_v48, 1.0 }
 0x15f   :  { %v278_v57 = vadd.f32 %v498_v40, %v277_v53  ;;  %v291_v59 = vadd.f32 1.0, %v450_v56 }
 0x161   :  { %v282_v62 = vsel %vm281_vm15, %v498_v40, %v278_v57  ;;  %v293_v2 = vmul.f32 %v291_v59, %v207_v0 }
 0x162   :  { %v287_v46 = vsel %vm284_vm1, %v286_v60, %v282_v62 }
 0x163   :  { %v288_v63 = vmul.f32 %v287_v46, %v263_v61  ;;  %v295_v7 = vmul.f32 %v293_v2, %v172_v58 }
 0x165   :  { %v451_v1 = vclamps-f32 %v288_v63, 1.0 }
 0x167   :  { %v292_v4 = vadd.f32 1.0, %v451_v1 }
 0x169   :  { %v294_v5 = vmul.f32 %v292_v4, %v208_v3 }
 0x16b   :  { %v296_v8 = vmul.f32 %v294_v5, %v174_v6 }
 0x16d   :  { %v297_v9 = vpack.c.bf16 %v296_v8, %v295_v7 }
 0x16f   :  { %468 = vmatmul.msk.bf16.vlgmr.msra.gmra.mxu2 %vm332_vm2, %v297_v9 }
 0x1f2   :  { %v345_v10 = vpop.f32.mrf.mxu2 }
 0x1f3   :  { %v350_v11 = vadd.f32 %v345_v10, %v298_v54 }
 0x1f5   :  { %352 = vst.msk [vmem:[#allocation3] sm:$0xff] %vm81_vm0, %v350_v11 }
 0x1fa   :  { %v347_v14 = vpop.f32.mrf.mxu2 }
 0x1fb   :  { %v351_v45 = vadd.f32 %v347_v14, %v299_v13 }
 0x1fc   :  { %v357_v15 = vld [vmem:[#allocation3] sm:$0xff] }
 0x1fd   :  { %353 = vst.msk [vmem:[#allocation3 + $0x8] sm:$0xff] %vm81_vm0, %v351_v45  ;;  %v359_v51 = vmul.f32 %v357_v15, %v357_v15 }
 0x1ff   :  { %v361_v16 = vsel %vm81_vm0, %v359_v51, 0.0 }
 0x200   :  { %362 = vadd.xlane.f32.xlu1 %v361_v16 }
 0x204   :  { %v358_v17 = vld [vmem:[#allocation3 + $0x8] sm:$0xff] }
 0x205   :  { %v360_v18 = vmul.f32 %v358_v17, %v358_v17 }
 0x207   :  { %v364_v19 = vsel %vm81_vm0, %v360_v18, 0.0 }
 0x208   :  { %365 = vadd.xlane.f32.xlu1 %v364_v19 }
 0x273   :  { %v363_v20 = vpop.xlane.xlu1 %362 }
 0x274   :  { %v374_v21 = vmul.f32 %v363_v20, %v673_v12 }
 0x276   :  { %v377_v22 = vadd.f32 1e-06, %v374_v21 }
 0x278   :  { %499 = vrsqrt.f32 %v377_v22  ;;  %vm385_vm4 = vweird.f32 %v377_v22 }
 0x27b   :  { %v366_v23 = vpop.xlane.xlu1 %365 }
 0x27c   :  { %v375_v24 = vmul.f32 %v366_v23, %v673_v12 }
 0x27e   :  { %v500_v25 = vpop.eup %499  ;;  %v378_v26 = vadd.f32 1e-06, %v375_v24 }
 0x27f   :  { %v380_v27 = vmul.f32 %v500_v25, %v377_v22  ;;  %vm386_vm3 = vweird.f32 %v500_v25 }
 0x280   :  { %501 = vrsqrt.f32 %v378_v26  ;;  %vm387_vm5 = vmor %vm385_vm4, %vm386_vm3  ;;  %vm395_vm7 = vweird.f32 %v378_v26 }
 0x281   :  { %v381_v28 = vmul.f32 %v500_v25, %v380_v27 }
 0x283   :  { %v382_v29 = vmul.f32 0.5, %v381_v28 }
 0x285   :  { %v383_v30 = vsub.f32 1.5, %v382_v29 }
 0x286   :  { %v502_v31 = vpop.eup %501 }
 0x287   :  { %v384_v33 = vmul.f32 %v500_v25, %v383_v30  ;;  %v390_v34 = vmul.f32 %v502_v31, %v378_v26  ;;  %vm396_vm6 = vweird.f32 %v502_v31 }
 0x288   :  { %vm397_vm8 = vmor %vm395_vm7, %vm396_vm6 }
 0x289   :  { %v388_v35 = vsel %vm387_vm5, %v500_v25, %v384_v33  ;;  %v391_v36 = vmul.f32 %v502_v31, %v390_v34 }
 0x28a   :  { %v402_v12 = vmul.f32 %v488_v32, %v388_v35 }
 0x28b   :  { %v392_v37 = vmul.f32 0.5, %v391_v36 }
 0x28c   :  { %v404_v38 = vmul.f32 %v402_v12, %v357_v15 }
 0x28d   :  { %v393_v39 = vsub.f32 1.5, %v392_v37 }
 0x28e   :  { %406 = vst.msk [vmem:[#allocation10] sm:$0xff] %vm81_vm0, %v404_v38 }
 0x28f   :  { %v394_v40 = vmul.f32 %v502_v31, %v393_v39 }
 0x291   :  { %v398_v41 = vsel %vm397_vm8, %v502_v31, %v394_v40 }
 0x292   :  { %v403_v42 = vmul.f32 %v488_v32, %v398_v41 }
 0x294   :  { %v405_v43 = vmul.f32 %v403_v42, %v358_v17 }
 0x296   :  { %407 = vst.msk [vmem:[#allocation10 + $0x8] sm:$0xff] %vm81_vm0, %v405_v43 }
 0x297   :  { %420 = dma.vmem_to_hbm [thread:$0]  %s413_s21, 256, %s415_s23, [#allocation6], %s612_s1, %s612_s1, %s613_s24  }
 0x298   :  { %603 = dma.done.wait [#allocation6], 256  }
 0x299   :  { %604 = vsyncadd [#allocation6], 4294967040 }
 0x29a   :  { %425 = vsyncpa [#allocation5], 1 }
 0x29b   :  { %426 = vsyncpa [#allocation8], 1 }
 0x29c   :  { %427 = vsyncpa [#allocation6], 1 }

</bundles_post_ra>
